<compile_context>
chip_gen: v7x
topology: tpu7x:2x2x1
jax: 0.10.0
libtpu: 0.0.40
codegen_flags: <defaults>
</compile_context>

<pallas_src>
import math

import numpy as np
import jax
import jax.numpy as jnp
from jax.experimental import pallas as pl
from jax.experimental.pallas import tpu as pltpu


# ----------------------------------------------------------------------------
# Constant-matrix builders (plain numpy, host side).
# ----------------------------------------------------------------------------
def _avgpool_axis_matrix(out_size: int, in_size: int) -> np.ndarray:
    """(out_size, in_size): AvgPool1d with the PPM kernel/stride rule."""
    stride = math.floor(in_size / out_size)
    kernel = in_size - (out_size - 1) * stride
    m = np.zeros((out_size, in_size), dtype=np.float32)
    for o in range(out_size):
        m[o, o * stride : o * stride + kernel] = 1.0 / kernel
    return m


def _bilinear_axis_matrix(out_size: int, in_size: int) -> np.ndarray:
    """(out_size, in_size): F.interpolate bilinear, align_corners=False."""
    m = np.zeros((out_size, in_size), dtype=np.float32)
    scale = in_size / out_size
    for o in range(out_size):
        src = (o + 0.5) * scale - 0.5
        src = max(src, 0.0)                      # PyTorch clamps negative coords to 0
        j0 = min(int(math.floor(src)), in_size - 1)
        j1 = min(j0 + 1, in_size - 1)
        lam = src - j0
        m[o, j0] += 1.0 - lam
        m[o, j1] += lam
    return m


def _block_diag(blocks):
    rows = sum(b.shape[0] for b in blocks)
    cols = sum(b.shape[1] for b in blocks)
    out = np.zeros((rows, cols), dtype=np.float32)
    r = c = 0
    for b in blocks:
        out[r : r + b.shape[0], c : c + b.shape[1]] = b
        r += b.shape[0]
        c += b.shape[1]
    return out


# ----------------------------------------------------------------------------
# Pallas kernel: whole PPM forward (all batches, all stages) in one invocation.
#   x_ref   : (N*Cin, H*W)      input, channels/batch on sublanes, spatial on lanes
#   pt_ref  : (H*W, S)          P_all^T, stacked pooling matrices (S = sum ps^2)
#   ut_ref  : (S, H*W)          U_all^T, stacked bilinear upsample matrices
#   wc_ref  : (N*M, N*Cin)      stacked per-stage 1x1-conv weights^T, block-diag over N
#   bc_ref  : (N*M, 1)          stacked per-stage conv biases
#   msk_ref : (N*M, S)          stage-selection 0/1 mask over pooled columns
#   wbs_ref : (N*Cin, N*M)      stacked per-stage bottleneck weight blocks^T (block-diag)
#   wbf_ref : (N*Cin, N*Cin)    bottleneck weight block for raw feats^T (block-diag)
#   bb_ref  : (N*Cin, 1)        bottleneck bias
#   o_ref   : (N*Cin, H*W)      output (lane-dense)
# ----------------------------------------------------------------------------
def _ppm_kernel(x_ref, pt_ref, ut_ref, wc_ref, bc_ref, msk_ref,
                wbs_ref, wbf_ref, bb_ref, o_ref):
    x = x_ref[...]                                                        # (N*Cin, HW)

    # adaptive avg-pool for all stages at once (spatial matmul, per-row independent)
    pooled = jnp.dot(x, pt_ref[...], preferred_element_type=jnp.float32)  # (N*Cin, S)

    # per-stage 1x1 conv + bias + ReLU (block-diag over batch), stage-select mask
    h = jnp.dot(wc_ref[...], pooled, preferred_element_type=jnp.float32) + bc_ref[...]
    h = jnp.maximum(h, 0.0) * msk_ref[...]                                # (N*M, S)

    # fold per-stage bottleneck weight blocks BEFORE upsampling (tiny K matmul)
    zb = jnp.dot(wbs_ref[...], h, preferred_element_type=jnp.float32)     # (N*Cin, S)

    # bottleneck contribution of the raw feats, bias folded into the accumulator
    acc = jnp.dot(wbf_ref[...], x, preferred_element_type=jnp.float32) + bb_ref[...]

    # one matmul does bilinear upsample + bottleneck for all stages
    acc = acc + jnp.dot(zb, ut_ref[...], preferred_element_type=jnp.float32)

    o_ref[...] = jnp.maximum(acc, 0.0)                                    # final relu_


# ----------------------------------------------------------------------------
# Wrapper
# ----------------------------------------------------------------------------
def ppm_forward(x_nchw, consts):
    """x_nchw: (N, Cin, H, W) float32.  consts: tuple from build_ppm_constants."""
    N, C, H, W = x_nchw.shape
    HW = H * W
    x2 = x_nchw.reshape(N * C, HW)          # free reshape of contiguous NCHW data
    arrays = (x2,) + tuple(consts)

    def full_spec(shape):
        nd = len(shape)
        return pl.BlockSpec(tuple(shape), lambda i, _nd=nd: (0,) * _nd)

    out2 = pl.pallas_call(
        _ppm_kernel,
        out_shape=jax.ShapeDtypeStruct((N * C, HW), jnp.float32),
        grid_spec=pltpu.PrefetchScalarGridSpec(
            num_scalar_prefetch=0,
            grid=(1,),                       # whole problem (~0.2 MB) in one step
            in_specs=[full_spec(a.shape) for a in arrays],
            out_specs=full_spec((N * C, HW)),
        ),
        compiler_params=pltpu.CompilerParams(
            dimension_semantics=("arbitrary",)),
    )(*arrays)
    # for large N, restore a batch grid axis here (pltpu.CORE_PARALLEL on v7x)
    return out2.reshape(N, C, H, W)


def build_ppm_constants(N, c_in, c_mid, pool_sizes, P_blocks, U_blocks,
                        Wks, bks, Wb_full, bb):
    """Precompute every constant array the kernel needs (host-side numpy)."""
    num_stages = len(pool_sizes)
    S = sum(ps * ps for ps in pool_sizes)

    P_all = np.concatenate(P_blocks, axis=0)                 # (S, HW)
    U_all = np.concatenate(U_blocks, axis=1)                 # (HW, S)
    P_T = np.ascontiguousarray(P_all.T).astype(np.float32)   # (HW, S)
    U_T = np.ascontiguousarray(U_all.T).astype(np.float32)   # (S, HW)

    WcT = np.concatenate([np.asarray(w).T for w in Wks], axis=0)      # (M, Cin)
    bc = np.concatenate([np.asarray(b) for b in bks]).astype(np.float32)  # (M,)

    Wb_full_np = np.asarray(Wb_full)
    WbT_stage = np.concatenate(
        [Wb_full_np[k * c_mid : (k + 1) * c_mid, :].T for k in range(num_stages)],
        axis=1)                                              # (Cin, M)
    WbfT = Wb_full_np[num_stages * c_mid :, :].T             # (Cin, Cin)

    # stage-selection mask over the stacked pooled columns
    M = num_stages * c_mid
    mask = np.zeros((M, S), dtype=np.float32)
    off = 0
    for k, ps in enumerate(pool_sizes):
        mask[k * c_mid : (k + 1) * c_mid, off : off + ps * ps] = 1.0
        off += ps * ps

    # fold batch into the sublane axis: channel-mixing weights -> block-diag over N,
    # spatial matrices (P, U) are batch-independent and shared.
    Wc_blk = _block_diag([WcT] * N)                          # (N*M, N*Cin)
    Wbs_blk = _block_diag([WbT_stage] * N)                   # (N*Cin, N*M)
    Wbf_blk = _block_diag([WbfT] * N)                        # (N*Cin, N*Cin)
    bc_blk = np.tile(bc, N)[:, None]                         # (N*M, 1)
    bb_blk = np.tile(np.asarray(bb), N)[:, None]             # (N*Cin, 1)
    mask_blk = np.tile(mask, (N, 1))                         # (N*M, S)

    to_j = lambda a: jnp.asarray(a, dtype=jnp.float32)
    return (to_j(P_T), to_j(U_T), to_j(Wc_blk), to_j(bc_blk), to_j(mask_blk),
            to_j(Wbs_blk), to_j(Wbf_blk), to_j(bb_blk))


# ----------------------------------------------------------------------------
# Pure-JAX reference (NCHW, explicit pooling windows, separable bilinear).
# ----------------------------------------------------------------------------
def ppm_reference(x_nchw, pool_sizes, Wks, bks, U_pairs, Wb_full, bb):
    N, Cin, H, W = x_nchw.shape
    priors = []
    for ps, Wk, bk, (Uy, Ux) in zip(pool_sizes, Wks, bks, U_pairs):
        sy, sx = H // ps, W // ps
        ky, kx = H - (ps - 1) * sy, W - (ps - 1) * sx
        rows = []
        for j in range(ps):
            cols = []
            for i in range(ps):
                win = x_nchw[:, :, j * sy : j * sy + ky, i * sx : i * sx + kx]
                cols.append(jnp.mean(win, axis=(2, 3)))      # (N, Cin)
            rows.append(jnp.stack(cols, axis=-1))            # (N, Cin, ps)
        pooled = jnp.stack(rows, axis=-2)                     # (N, Cin, ps, ps)
        z = jnp.einsum("ncyx,cd->ndyx", pooled, Wk) + bk[None, :, None, None]
        z = jnp.maximum(z, 0.0)
        up = jnp.einsum("hy,ndyx,wx->ndhw", Uy, z, Ux)        # (N, Cmid, H, W)
        priors.append(up)
    cat = jnp.concatenate(priors + [x_nchw], axis=1)          # (N, Ctot, H, W)
    out = jnp.einsum("nchw,cd->ndhw", cat, Wb_full) + bb[None, :, None, None]
    return jnp.maximum(out, 0.0)


# ----------------------------------------------------------------------------
# Main
# ----------------------------------------------------------------------------
if __name__ == "__main__":
    # module config (small, consistent with the PyTorch module)
    N, C_IN, H, W = 2, 4, 16, 16          # PyTorch input: (2, 4, 16, 16) NCHW
    C_MID = 2                              # `channels`
    POOL_SIZES = (1, 2, 3, 6)
    NUM_STAGES = len(POOL_SIZES)
    C_TOT = C_IN + NUM_STAGES * C_MID

    key = jax.random.PRNGKey(0)
    keys = jax.random.split(key, 3 + 2 * NUM_STAGES)

    x_nchw = jax.random.normal(keys[0], (N, C_IN, H, W), dtype=jnp.float32)

    # synthetic parameters: 1x1 convs stored in "math" orientation
    #   stage conv:  Wk (Cin, Cmid), bk (Cmid,)
    #   bottleneck:  Wb_full (Ctot, Cin), bb (Cin,)   (cat order: stages..., feats)
    Wb_full = 0.3 * jax.random.normal(keys[1], (C_TOT, C_IN), dtype=jnp.float32)
    bb = 0.1 * jax.random.normal(keys[2], (C_IN,), dtype=jnp.float32)

    Wks, bks, U_pairs, P_blocks, U_blocks = [], [], [], [], []
    for s, ps in enumerate(POOL_SIZES):
        Py = _avgpool_axis_matrix(ps, H)
        Px = _avgpool_axis_matrix(ps, W)
        Uy = _bilinear_axis_matrix(H, ps)
        Ux = _bilinear_axis_matrix(W, ps)
        P_blocks.append(np.kron(Py, Px))                   # (ps*ps, H*W)
        U_blocks.append(np.kron(Uy, Ux))                   # (H*W, ps*ps)
        U_pairs.append((jnp.asarray(Uy), jnp.asarray(Ux)))
        Wks.append(0.3 * jax.random.normal(keys[3 + 2 * s], (C_IN, C_MID),
                                           dtype=jnp.float32))
        bks.append(0.1 * jax.random.normal(keys[4 + 2 * s], (C_MID,),
                                           dtype=jnp.float32))

    consts = build_ppm_constants(N, C_IN, C_MID, POOL_SIZES, P_blocks, U_blocks,
                                 Wks, bks, Wb_full, bb)

    out = ppm_forward(x_nchw, consts)
    out = jax.block_until_ready(out)

    ref = ppm_reference(x_nchw, POOL_SIZES, Wks, bks, U_pairs, Wb_full, bb)
    np.testing.assert_allclose(np.asarray(out), np.asarray(ref), rtol=2e-3, atol=2e-3)

    print("KERNEL_OK")
</pallas_src>

<mosaic_0001>
module attributes {stable_mosaic.version = 11 : i64} {
  func.func @_ppm_kernel(%arg0: i32, %arg1: memref<8x256xf32, #tpu.memory_space<vmem>>, %arg2: memref<256x50xf32, #tpu.memory_space<vmem>>, %arg3: memref<50x256xf32, #tpu.memory_space<vmem>>, %arg4: memref<16x8xf32, #tpu.memory_space<vmem>>, %arg5: memref<16x1xf32, #tpu.memory_space<vmem>>, %arg6: memref<16x50xf32, #tpu.memory_space<vmem>>, %arg7: memref<8x16xf32, #tpu.memory_space<vmem>>, %arg8: memref<8x8xf32, #tpu.memory_space<vmem>>, %arg9: memref<8x1xf32, #tpu.memory_space<vmem>>, %arg10: memref<8x256xf32, #tpu.memory_space<vmem>>) attributes {dimension_semantics = [#tpu.dimension_semantics<arbitrary>], iteration_bounds = array<i64: 1>, scalar_prefetch = 0 : i64, scratch_operands = 0 : i64, tpu.core_type = #tpu.core_type<tc>, window_params = [{pipeline_mode = #tpu.pipeline_mode<synchronous>, transform_indices = @transform_0, window_bounds = array<i64: 8, 256>}, {pipeline_mode = #tpu.pipeline_mode<synchronous>, transform_indices = @transform_1, window_bounds = array<i64: 256, 50>}, {pipeline_mode = #tpu.pipeline_mode<synchronous>, transform_indices = @transform_2, window_bounds = array<i64: 50, 256>}, {pipeline_mode = #tpu.pipeline_mode<synchronous>, transform_indices = @transform_3, window_bounds = array<i64: 16, 8>}, {pipeline_mode = #tpu.pipeline_mode<synchronous>, transform_indices = @transform_4, window_bounds = array<i64: 16, 1>}, {pipeline_mode = #tpu.pipeline_mode<synchronous>, transform_indices = @transform_5, window_bounds = array<i64: 16, 50>}, {pipeline_mode = #tpu.pipeline_mode<synchronous>, transform_indices = @transform_6, window_bounds = array<i64: 8, 16>}, {pipeline_mode = #tpu.pipeline_mode<synchronous>, transform_indices = @transform_7, window_bounds = array<i64: 8, 8>}, {pipeline_mode = #tpu.pipeline_mode<synchronous>, transform_indices = @transform_8, window_bounds = array<i64: 8, 1>}, {pipeline_mode = #tpu.pipeline_mode<synchronous>, transform_indices = @transform_9, window_bounds = array<i64: 8, 256>}]} {
    %c0 = arith.constant 0 : index
    %c0_0 = arith.constant 0 : index
    %0 = vector.load %arg1[%c0, %c0_0] : memref<8x256xf32, #tpu.memory_space<vmem>>, vector<8x256xf32>
    %c0_1 = arith.constant 0 : index
    %c0_2 = arith.constant 0 : index
    %1 = vector.load %arg2[%c0_1, %c0_2] : memref<256x50xf32, #tpu.memory_space<vmem>>, vector<256x50xf32>
    %cst = arith.constant dense<0.000000e+00> : vector<8x50xf32>
    %2 = tpu.matmul %0, %1, %cst {dimension_numbers = #tpu.dot_dimension_numbers<[1], [0], [0], [1], [0, 0, 1, 1], [], []>} : vector<8x256xf32>, vector<256x50xf32>, vector<8x50xf32> -> vector<8x50xf32>
    %c0_3 = arith.constant 0 : index
    %c0_4 = arith.constant 0 : index
    %3 = vector.load %arg4[%c0_3, %c0_4] : memref<16x8xf32, #tpu.memory_space<vmem>>, vector<16x8xf32>
    %cst_5 = arith.constant dense<0.000000e+00> : vector<16x50xf32>
    %4 = tpu.matmul %3, %2, %cst_5 {dimension_numbers = #tpu.dot_dimension_numbers<[1], [0], [0], [1], [0, 0, 1, 1], [], []>} : vector<16x8xf32>, vector<8x50xf32>, vector<16x50xf32> -> vector<16x50xf32>
    %c0_6 = arith.constant 0 : index
    %c0_7 = arith.constant 0 : index
    %5 = vector.load %arg5[%c0_6, %c0_7] : memref<16x1xf32, #tpu.memory_space<vmem>>, vector<16x1xf32>
    %6 = vector.broadcast %5 : vector<16x1xf32> to vector<16x50xf32>
    %7 = arith.addf %4, %6 : vector<16x50xf32>
    %cst_8 = arith.constant 0.000000e+00 : f32
    %8 = vector.broadcast %cst_8 : f32 to vector<16x50xf32>
    %9 = arith.maximumf %7, %8 : vector<16x50xf32>
    %c0_9 = arith.constant 0 : index
    %c0_10 = arith.constant 0 : index
    %10 = vector.load %arg6[%c0_9, %c0_10] : memref<16x50xf32, #tpu.memory_space<vmem>>, vector<16x50xf32>
    %11 = arith.mulf %9, %10 : vector<16x50xf32>
    %c0_11 = arith.constant 0 : index
    %c0_12 = arith.constant 0 : index
    %12 = vector.load %arg7[%c0_11, %c0_12] : memref<8x16xf32, #tpu.memory_space<vmem>>, vector<8x16xf32>
    %cst_13 = arith.constant dense<0.000000e+00> : vector<8x50xf32>
    %13 = tpu.matmul %12, %11, %cst_13 {dimension_numbers = #tpu.dot_dimension_numbers<[1], [0], [0], [1], [0, 0, 1, 1], [], []>} : vector<8x16xf32>, vector<16x50xf32>, vector<8x50xf32> -> vector<8x50xf32>
    %c0_14 = arith.constant 0 : index
    %c0_15 = arith.constant 0 : index
    %14 = vector.load %arg8[%c0_14, %c0_15] : memref<8x8xf32, #tpu.memory_space<vmem>>, vector<8x8xf32>
    %cst_16 = arith.constant dense<0.000000e+00> : vector<8x256xf32>
    %15 = tpu.matmul %14, %0, %cst_16 {dimension_numbers = #tpu.dot_dimension_numbers<[1], [0], [0], [1], [0, 0, 1, 1], [], []>} : vector<8x8xf32>, vector<8x256xf32>, vector<8x256xf32> -> vector<8x256xf32>
    %c0_17 = arith.constant 0 : index
    %c0_18 = arith.constant 0 : index
    %16 = vector.load %arg9[%c0_17, %c0_18] : memref<8x1xf32, #tpu.memory_space<vmem>>, vector<8x1xf32>
    %17 = vector.broadcast %16 : vector<8x1xf32> to vector<8x256xf32>
    %18 = arith.addf %15, %17 : vector<8x256xf32>
    %c0_19 = arith.constant 0 : index
    %c0_20 = arith.constant 0 : index
    %19 = vector.load %arg3[%c0_19, %c0_20] : memref<50x256xf32, #tpu.memory_space<vmem>>, vector<50x256xf32>
    %cst_21 = arith.constant dense<0.000000e+00> : vector<8x256xf32>
    %20 = tpu.matmul %13, %19, %cst_21 {dimension_numbers = #tpu.dot_dimension_numbers<[1], [0], [0], [1], [0, 0, 1, 1], [], []>} : vector<8x50xf32>, vector<50x256xf32>, vector<8x256xf32> -> vector<8x256xf32>
    %21 = arith.addf %18, %20 : vector<8x256xf32>
    %cst_22 = arith.constant 0.000000e+00 : f32
    %22 = vector.broadcast %cst_22 : f32 to vector<8x256xf32>
    %23 = arith.maximumf %21, %22 : vector<8x256xf32>
    %c0_23 = arith.constant 0 : index
    %c0_24 = arith.constant 0 : index
    %24 = vector.load %arg10[%c0_23, %c0_24] : memref<8x256xf32, #tpu.memory_space<vmem>>, vector<8x256xf32>
    tpu.vector_store %arg10[%c0_23, %c0_24], %23 {strides = array<i32>} : memref<8x256xf32, #tpu.memory_space<vmem>>, vector<8x256xf32>,
    return
  }
  func.func @transform_0(%arg0: i32) -> (i32, i32) {
    %c0_i32 = arith.constant 0 : i32
    %c0_i32_0 = arith.constant 0 : i32
    %c0_i32_1 = arith.constant 0 : i32
    return %c0_i32, %c0_i32_0 : i32, i32
  }
  func.func @transform_1(%arg0: i32) -> (i32, i32) {
    %c0_i32 = arith.constant 0 : i32
    %c0_i32_0 = arith.constant 0 : i32
    %c0_i32_1 = arith.constant 0 : i32
    return %c0_i32, %c0_i32_0 : i32, i32
  }
  func.func @transform_2(%arg0: i32) -> (i32, i32) {
    %c0_i32 = arith.constant 0 : i32
    %c0_i32_0 = arith.constant 0 : i32
    %c0_i32_1 = arith.constant 0 : i32
    return %c0_i32, %c0_i32_0 : i32, i32
  }
  func.func @transform_3(%arg0: i32) -> (i32, i32) {
    %c0_i32 = arith.constant 0 : i32
    %c0_i32_0 = arith.constant 0 : i32
    %c0_i32_1 = arith.constant 0 : i32
    return %c0_i32, %c0_i32_0 : i32, i32
  }
  func.func @transform_4(%arg0: i32) -> (i32, i32) {
    %c0_i32 = arith.constant 0 : i32
    %c0_i32_0 = arith.constant 0 : i32
    %c0_i32_1 = arith.constant 0 : i32
    return %c0_i32, %c0_i32_0 : i32, i32
  }
  func.func @transform_5(%arg0: i32) -> (i32, i32) {
    %c0_i32 = arith.constant 0 : i32
    %c0_i32_0 = arith.constant 0 : i32
    %c0_i32_1 = arith.constant 0 : i32
    return %c0_i32, %c0_i32_0 : i32, i32
  }
  func.func @transform_6(%arg0: i32) -> (i32, i32) {
    %c0_i32 = arith.constant 0 : i32
    %c0_i32_0 = arith.constant 0 : i32
    %c0_i32_1 = arith.constant 0 : i32
    return %c0_i32, %c0_i32_0 : i32, i32
  }
  func.func @transform_7(%arg0: i32) -> (i32, i32) {
    %c0_i32 = arith.constant 0 : i32
    %c0_i32_0 = arith.constant 0 : i32
    %c0_i32_1 = arith.constant 0 : i32
    return %c0_i32, %c0_i32_0 : i32, i32
  }
  func.func @transform_8(%arg0: i32) -> (i32, i32) {
    %c0_i32 = arith.constant 0 : i32
    %c0_i32_0 = arith.constant 0 : i32
    %c0_i32_1 = arith.constant 0 : i32
    return %c0_i32, %c0_i32_0 : i32, i32
  }
  func.func @transform_9(%arg0: i32) -> (i32, i32) {
    %c0_i32 = arith.constant 0 : i32
    %c0_i32_0 = arith.constant 0 : i32
    %c0_i32_1 = arith.constant 0 : i32
    return %c0_i32, %c0_i32_0 : i32, i32
  }
}

</mosaic_0001>

<bundles_post_ra>
// kernel: tpu_custom_call.1
= control target key start
LH: loop header
LB: loop body
LE: loop exit
PB: predicated region body
PF: predicated region fallthrough
CT: control target
= control target key end

     0   :  { %s898_s0 = inlined_call_operand.vmem [shape: f32[8,256], index: 0, kind: input, shape index: {}]   ;;  %s899_s1 = inlined_call_operand.vmem [shape: f32[256,50], index: 1, kind: input, shape index: {}]   ;;  %s900_s2 = inlined_call_operand.vmem [shape: f32[50,256], index: 2, kind: input, shape index: {}]   ;;  %s901_s3 = inlined_call_operand.vmem [shape: f32[16,8], index: 3, kind: input, shape index: {}]   ;;  %s902_s4 = inlined_call_operand.vmem [shape: f32[16,1], index: 4, kind: input, shape index: {}]   ;;  %s903_s5 = inlined_call_operand.vmem [shape: f32[16,50], index: 5, kind: input, shape index: {}]   ;;  %s904_s6 = inlined_call_operand.vmem [shape: f32[8,16], index: 6, kind: input, shape index: {}]   ;;  %s905_s7 = inlined_call_operand.vmem [shape: f32[8,8], index: 7, kind: input, shape index: {}]   ;;  %s906_s8 = inlined_call_operand.vmem [shape: f32[8,1], index: 8, kind: input, shape index: {}]   ;;  %s907_s9 = inlined_call_operand.hbm [shape: f32[8,256], index: 9, kind: output, shape index: {}]  }
   0x1   :  { %v51_v0 = vld [vmem:[%s899_s1 + $0x80] sm:$0xff]  ;;  %v52_v1 = vld [vmem:[%s899_s1 + $0x88] sm:$0xff]  ;;  %v53_v5 = vld [vmem:[%s899_s1 + $0x90] sm:$0xff] }
   0x2   :  { %v35_v2 = vld [vmem:[%s899_s1] sm:$0xff]  ;;  %v571_v3 = vpack.c.bf16 %v52_v1, %v51_v0  ;;  %v36_v4 = vld [vmem:[%s899_s1 + $0x8] sm:$0xff]  ;;  %v54_v6 = vld [vmem:[%s899_s1 + $0x98] sm:$0xff] }
   0x3   :  { %v573_v7 = vpack.c.bf16 %v36_v4, %v35_v2  ;;  %v575_v8 = vpack.c.bf16 %v54_v6, %v53_v5  ;;  %v37_v9 = vld [vmem:[%s899_s1 + $0x10] sm:$0xff]  ;;  %v38_v10 = vld [vmem:[%s899_s1 + $0x18] sm:$0xff]  ;;  %v55_v11 = vld [vmem:[%s899_s1 + $0xa0] sm:$0xff] }
   0x4   :  { %572 = vmatprep.subr.bf16.mxu0 %v571_v3  ;;  %v56_v12 = vld [vmem:[%s899_s1 + $0xa8] sm:$0xff]  ;;  %v577_v13 = vpack.c.bf16 %v38_v10, %v37_v9  ;;  %v39_v15 = vld [vmem:[%s899_s1 + $0x20] sm:$0xff]  ;;  %v57_v17 = vld [vmem:[%s899_s1 + $0xb0] sm:$0xff] }
   0x5   :  { %574 = vmatpush3.bf16.msra.mxu0 %v573_v7  ;;  %v579_v14 = vpack.c.bf16 %v56_v12, %v55_v11  ;;  %v40_v16 = vld [vmem:[%s899_s1 + $0x28] sm:$0xff]  ;;  %v58_v18 = vld [vmem:[%s899_s1 + $0xb8] sm:$0xff]  ;;  %v41_v21 = vld [vmem:[%s899_s1 + $0x30] sm:$0xff] }
   0x6   :  { %576 = vmatprep.subr.bf16.mxu0 %v575_v8  ;;  %v581_v19 = vpack.c.bf16 %v40_v16, %v39_v15  ;;  %v583_v20 = vpack.c.bf16 %v58_v18, %v57_v17  ;;  %v42_v22 = vld [vmem:[%s899_s1 + $0x38] sm:$0xff]  ;;  %v59_v23 = vld [vmem:[%s899_s1 + $0xc0] sm:$0xff]  ;;  %v60_v24 = vld [vmem:[%s899_s1 + $0xc8] sm:$0xff] }
   0x7   :  { %v765_v25 = vld [vmem:[%s898_s0 + $0x8] sm:$0xff] }
   0x8   :  { %131 = vmatprep.mubr.f32.mxu0 %v765_v25 }
   0x9   :  { %578 = vmatpush3.bf16.msra.mxu0 %v577_v13 }
   0xa   :  { %580 = vmatprep.subr.bf16.mxu0 %v579_v14 }
   0xb   :  { %14 = vsyncpa [#allocation3], 0  ;;  %v585_v26 = vpack.c.bf16 %v42_v22, %v41_v21  ;;  %v587_v27 = vpack.c.bf16 %v60_v24, %v59_v23  ;;  %v43_v28 = vld [vmem:[%s899_s1 + $0x40] sm:$0xff]  ;;  %v44_v29 = vld [vmem:[%s899_s1 + $0x48] sm:$0xff]  ;;  %vm151_vm0 = vcmask 64512   ;;  %v653_v52 = vmov 0  }
   0xc   :  { %v61_v30 = vld [vmem:[%s899_s1 + $0xd0] sm:$0xff]  ;;  %v62_v31 = vld [vmem:[%s899_s1 + $0xd8] sm:$0xff]  ;;  %v589_v32 = vpack.c.bf16 %v44_v29, %v43_v28  ;;  %v63_v36 = vld [vmem:[%s899_s1 + $0xe0] sm:$0xff]  ;;  %627 = vset.pattern.permute.xlu0 %v653_v52  ;;  %628 = vset.pattern.permute.xlu1 %v653_v52  ;;  %v654_v58 = vmov 0.0|0.0   ;;  %vm655_vm1 = vmmov 0   ;;  %v656_v59 = vmov 0.0  }
   0xd   :  { %582 = vmatpush3.bf16.msra.mxu0 %v581_v19  ;;  %v591_v33 = vpack.c.bf16 %v62_v31, %v61_v30  ;;  %v45_v34 = vld [vmem:[%s899_s1 + $0x50] sm:$0xff]  ;;  %v46_v35 = vld [vmem:[%s899_s1 + $0x58] sm:$0xff]  ;;  %v64_v37 = vld [vmem:[%s899_s1 + $0xe8] sm:$0xff]  ;;  %vm240_vm2 = vcmask 130048   ;;  %vm413_vm3 = vcmask 1041408   ;;  %vm409_vm4 = vcmask 408576  }
   0xe   :  { %584 = vmatprep.subr.bf16.mxu0 %v583_v20  ;;  %v593_v38 = vpack.c.bf16 %v46_v35, %v45_v34  ;;  %v595_v39 = vpack.c.bf16 %v64_v37, %v63_v36  ;;  %v47_v40 = vld [vmem:[%s899_s1 + $0x60] sm:$0xff]  ;;  %v48_v41 = vld [vmem:[%s899_s1 + $0x68] sm:$0xff]  ;;  %v65_v42 = vld [vmem:[%s899_s1 + $0xf0] sm:$0xff] }
   0xf   :  { %v66_v43 = vld [vmem:[%s899_s1 + $0xf8] sm:$0xff]  ;;  %v597_v44 = vpack.c.bf16 %v48_v41, %v47_v40  ;;  %v49_v46 = vld [vmem:[%s899_s1 + $0x70] sm:$0xff]  ;;  %v33_v49 = vld [vmem:[%s898_s0] sm:$0xff] }
  0x10   :  { %v599_v45 = vpack.c.bf16 %v66_v43, %v65_v42  ;;  %v50_v47 = vld [vmem:[%s899_s1 + $0x78] sm:$0xff]  ;;  %v137_v50 = vld [vmem:[%s901_s3] sm:$0xff]  ;;  %v140_v53 = vld [vmem:[%s902_s4 + $0x8] sm:$0xff] }
  0x11   :  { %586 = vmatpush3.bf16.msra.mxu0 %v585_v26  ;;  %v601_v48 = vpack.c.bf16 %v50_v47, %v49_v46  ;;  %561 = vmatprep.mubr.msk.f32.mxu1 %vm151_vm0, %v137_v50  ;;  %v139_v51 = vld [vmem:[%s902_s4] sm:$0xff]  ;;  %v138_v57 = vld [vmem:[%s901_s3 + $0x8] sm:$0xff]  ;;  %v398_v10 = vld [vmem:[%s900_s2 + $0x18] sm:$0xff] }
  0x12   :  { %588 = vmatprep.subr.bf16.mxu0 %v587_v27  ;;  %143 = vperm.xlu0 %627, %v139_v51   ;;  %v236_v1 = vld [vmem:[%s903_s5 + $0x8] sm:$0xff]  ;;  %v235_v4 = vld [vmem:[%s903_s5] sm:$0xff]  ;;  %v397_v14 = vld [vmem:[%s900_s2 + $0x10] sm:$0xff]  ;;  %s657_s5 = smov [#allocation2]  }
  0x13   :  { %v396_v9 = vld [vmem:[%s900_s2 + $0x8] sm:$0xff]  ;;  %v239_v11 = vld [vmem:[%s904_s6] sm:$0xff]  ;;  %v402_v16 = vld [vmem:[%s900_s2 + $0x38] sm:$0xff]  ;;  %s503_s28 = sshll.u32 %s657_s5, 4  ;;  %s504_s28 = int_to_ptr.vmem [resolvable:$true] %s503_s28 }
  0x14   :  { %v606_v12 = vpack.c.bf16 %v398_v10, %v396_v9  ;;  %v395_v13 = vld [vmem:[%s900_s2] sm:$0xff]  ;;  %v400_v15 = vld [vmem:[%s900_s2 + $0x28] sm:$0xff]  ;;  %v401_v21 = vld [vmem:[%s900_s2 + $0x30] sm:$0xff]  ;;  %p634_p1 = scmp.lt.s32.totalorder %s504_s28, %s504_s28 }
  0x15   :  { %590 = vmatpush3.bf16.msra.mxu0 %v589_v32  ;;  %v314_v17 = vld [vmem:[%s905_s7] sm:$0xff]  ;;  %v608_v18 = vpack.c.bf16 %v397_v14, %v395_v13  ;;  %v610_v19 = vpack.c.bf16 %v402_v16, %v400_v15  ;;  %v404_v22 = vld [vmem:[%s900_s2 + $0x48] sm:$0xff]  ;;  %v406_v23 = vld [vmem:[%s900_s2 + $0x58] sm:$0xff] }
  0x16   :  { %592 = vmatprep.subr.bf16.mxu0 %v591_v33  ;;  %148 = vperm.xlu0 %627, %v140_v53   ;;  %v399_v20 = vld [vmem:[%s900_s2 + $0x20] sm:$0xff]  ;;  %v405_v27 = vld [vmem:[%s900_s2 + $0x50] sm:$0xff]  ;;  %v408_v29 = vld [vmem:[%s900_s2 + $0x68] sm:$0x3] }
  0x17   :  { %v612_v24 = vpack.c.bf16 %v401_v21, %v399_v20  ;;  %v403_v26 = vld [vmem:[%s900_s2 + $0x40] sm:$0xff] }
  0x18   :  { %v616_v28 = vpack.c.bf16 %v405_v27, %v403_v26  ;;  %v407_v30 = vld [vmem:[%s900_s2 + $0x60] sm:$0x3]  ;;  %s629_s2 = scalar_lea.vmem %s504_s28, 256 }
  0x19   :  { %594 = vmatpush3.bf16.msra.mxu0 %v593_v38  ;;  %v315_v31 = vld [vmem:[%s906_s8] sm:$0xff]  ;;  %p630_p0 = scmp.ne.s32.totalorder %s504_s28, %s629_s2  ;;  %p635_p2 = scmp.lt.s32.totalorder %s629_s2, %s629_s2 }
  0x1a   :  { %596 = vmatprep.subr.bf16.mxu0 %v595_v39  ;;  %318 = vperm.xlu1 %628, %v315_v31  }
  0x1b   :  { %p636_p3 = por %p635_p2, %p634_p1 }
  0x1d   :  { %598 = vmatpush3.bf16.msra.mxu0 %v597_v44  ;;  %p637_p4 = pnand %p636_p3, %p630_p0 }
  0x1e   :  { %600 = vmatprep.subr.bf16.mxu0 %v599_v45 }
  0x21   :  { %602 = vmatpush3.bf16.msra.mxu0 %v601_v48 }
  0x24   :  { %132 = vmatmul.mubr.f32.vlgmr.msra.gmra.mrb[0].mxu0 %v33_v49 }
  0x91   :  { %v144_v60 = vpop.permute.xlu0 %143 }
  0x95   :  { %v149_v61 = vpop.permute.xlu0 %148 }
  0x99   :  { %v319_v34 = vpop.permute.xlu1 %318 }
  0xf7   :  { %v550_v54 = vpop.f32.mrb[0].mxu0 }
  0xf8   :  { %v551_v55 = vpop.f32.mrb[1].mxu0 }
  0xf9   :  { %v552_v56 = vadd.f32 %v551_v55, %v550_v54 }
  0xfb   :  { %559 = vmatprep.subr.mxu1 %v552_v56 }
  0xfc   :  { %560 = vmatpush3.msra.mxu1 %v552_v56 }
  0xfd   :  { %562 = vmatmul.mubr.msk.f32.vlgmr.msra.gmra.mrb[0].mxu1 %vm151_vm0, %v138_v57  ;;  %603 = vmatprep.subr.bf16.mxu1 %v654_v58 }
  0xfe   :  { %568 = vmatprep.mubr.msk.f32.mxu1 %vm655_vm1, %v656_v59 }
 0x1d0   :  { %v563_v62 = vpop.f32.mrb[0].mxu1 }
 0x1d1   :  { %v230_v63 = vadd.f32 %v563_v62, %v149_v61  ;;  %v224_v0 = vpop.f32.mrb[1].mxu1 }
 0x1d2   :  { %v225_v2 = vadd.f32 %v224_v0, %v144_v60 }
 0x1d3   :  { %v234_v3 = vmax.f32 %v230_v63, 0.0 }
 0x1d4   :  { %v233_v5 = vmax.f32 %v225_v2, 0.0 }
 0x1d5   :  { %v238_v6 = vmul.f32 %v236_v1, %v234_v3 }
 0x1d6   :  { %v237_v7 = vmul.f32 %v235_v4, %v233_v5 }
 0x1d8   :  { %v604_v8 = vpack.c.bf16 %v238_v6, %v237_v7 }
 0x1da   :  { %605 = vmatpush3.bf16.msra.mxu1 %v604_v8 }
 0x1db   :  { %324 = vmatprep.subr.mxu1 %v765_v25  ;;  %v614_v25 = vpack.c.bf16 %v406_v23, %v404_v22 }
 0x1dd   :  { %569 = vmatmul.mubr.msk.f32.vlgmr.msra.gmra.mrb[2].mxu1 %vm240_vm2, %v239_v11 }
 0x1de   :  { %325 = vmatpush1.msra.mxu1 %v33_v49  ;;  %388 = vmatprep.mubr.f32.mxu1 %v656_v59 }
 0x1df   :  { %607 = vmatprep.subr.bf16.mxu1 %v606_v12 }
 0x1e1   :  { %514 = vmatmul.mubr.msk.f32.vlgmr.msra.gmra.mrb[4].mxu1 %vm151_vm0, %v314_v17 }
 0x1e2   :  { %609 = vmatpush1.bf16.msra.mxu1 %v608_v18  ;;  %484 = vmatprep.mubr.f32.mxu1 %v656_v59 }
 0x1e3   :  { %611 = vmatprep.subr.bf16.mxu1 %v610_v19 }
 0x1e6   :  { %613 = vmatpush1.bf16.msra.mxu1 %v612_v24 }
 0x1e7   :  { %615 = vmatprep.subr.bf16.mxu1 %v614_v25 }
 0x1ea   :  { %617 = vmatpush1.bf16.msra.mxu1 %v616_v28 }
 0x1eb   :  { %515 = vmatprep.subr.msk.mxu1 %vm413_vm3, %v408_v29 }
 0x1ee   :  { %516 = vmatpush1.msk.msra.mxu1 %vm413_vm3, %v407_v30 }
 0x2b0   :  { %v310_v32 = vpop.f32.mrb[2].mxu1 }
 0x2b1   :  { %v570_v33 = vpop.f32.mrb[3].mxu1  ;;  %517 = vmatmul.mubr.msk.f32.vlgmr.msra.gmra.mrb[4].mxu1 %vm409_vm4, %v310_v32 }
 0x384   :  { %v486_v35 = vpop.f32.mrb[4].mxu1 }
 0x385   :  { %v618_v36 = vadd.f32 %v486_v35, %v319_v34  ;;  %v488_v37 = vpop.f32.mrb[5].mxu1 }
 0x386   :  { %v619_v38 = vadd.f32 %v488_v37, %v319_v34 }
 0x387   :  { %v493_v39 = vmax.f32 %v618_v36, 0.0 }
 0x388   :  { %v494_v40 = vmax.f32 %v619_v38, 0.0 }
 0x389   :  { %495 = vst [vmem:[#allocation2] sm:$0xff] %v493_v39 }
 0x38a   :  { %496 = vst [vmem:[#allocation2 + $0x8] sm:$0xff] %v494_v40 }
 0x38b   :  { %640 = shalt.err (!%p637_p4)
}
 0x38c   :  { %s641_s30 = scalar_lea.hbm %s907_s9, 256 }
 0x38d   :  { %p642_p5 = scmp.ne.s32.totalorder %s907_s9, %s641_s30  ;;  %p645_p6 = scmp.lt.u32.totalorder %s641_s30, %s907_s9 }
 0x38f   :  { %p647_p7 = pnand %p645_p6, %p642_p5 }
 0x391   :  { %650 = shalt.err (!%p647_p7)
}
 0x392   :  { %506 = dma.vmem_to_hbm [thread:$0]  %s504_s28, 256, %s907_s9, [#allocation3]  }
 0x393   :  { %651 = dma.done.wait [#allocation3], 256  }
 0x394   :  { %652 = vsyncadd [#allocation3], 4294967040 }
 0x395   :  { %510 = vsyncpa [#allocation3], 1 }

</bundles_post_ra>
